<compile_context>
chip_gen: v7x
topology: tpu7x:2x2x1
jax: 0.10.0
libtpu: 0.0.40
codegen_flags: <defaults>
</compile_context>

<pallas_src>
import functools

import jax
import jax.numpy as jnp
from jax.experimental import pallas as pl
from jax.experimental.pallas import tpu as pltpu


NUM_LSE_SPLITS = 2   # leading "parallel" axis over queue tiles: both TCs on v7x,
                     # plain sequential loop on single-core v5e/v6e.


def _round_up(x, m):
    return (x + m - 1) // m * m


# ----------------------------------------------------------------------------
# Kernel 1: momentum parameter update  pk = gamma * pk + (1 - gamma) * pq
# 2-D tiled (byte-capped blocks, lane dim multiple of 128), aliased in place.
# ----------------------------------------------------------------------------
def _momentum_update_kernel(pq_ref, pk_ref, out_ref, *, gamma):
    pq = pq_ref[...].astype(jnp.float32)
    pk = pk_ref[...].astype(jnp.float32)
    out_ref[...] = (gamma * pk + (1.0 - gamma) * pq).astype(out_ref.dtype)


def momentum_update(param_q, param_k, gamma, block_bytes=2 << 20):
    R, C = param_k.shape
    itemsize = param_k.dtype.itemsize
    bc = C if C <= 2048 else 2048                       # multiple of 128 (or full C)
    br = max(8, min(R, block_bytes // (bc * itemsize)))
    if br < R:
        br = max(8, (br // 8) * 8)
    return pl.pallas_call(
        functools.partial(_momentum_update_kernel, gamma=float(gamma)),
        out_shape=jax.ShapeDtypeStruct((R, C), param_k.dtype),
        grid=(pl.cdiv(R, br), pl.cdiv(C, bc)),
        in_specs=[pl.BlockSpec((br, bc), lambda i, j: (i, j)),
                  pl.BlockSpec((br, bc), lambda i, j: (i, j))],
        out_specs=pl.BlockSpec((br, bc), lambda i, j: (i, j)),
        input_output_aliases={1: 0},                    # update pk in place
        compiler_params=pltpu.CompilerParams(
            dimension_semantics=("parallel", "parallel")),
    )(param_q, param_k)


# ----------------------------------------------------------------------------
# Kernel 2: encode (mean-pooled tokens -> embeddings), in-batch cosine scores,
# positive logits and the LSE seed (m0, l0). Single-shot, small operands.
# ----------------------------------------------------------------------------
def _encode_kernel(pq_ref, pk_ref, wq_ref, bq_ref, wk_ref, bk_ref,
                   embk_ref, kn_ref, qn_ref, diag_ref, m0_ref, l0_ref,
                   *, scale, eps):
    emb_q = (jnp.dot(pq_ref[...].astype(jnp.float32), wq_ref[...].astype(jnp.float32),
                     preferred_element_type=jnp.float32)
             + bq_ref[...].astype(jnp.float32))
    emb_k = (jnp.dot(pk_ref[...].astype(jnp.float32), wk_ref[...].astype(jnp.float32),
                     preferred_element_type=jnp.float32)
             + bk_ref[...].astype(jnp.float32))
    embk_ref[...] = emb_k.astype(embk_ref.dtype)

    # rsqrt*mul normalization (EUP); scale is folded into the query side.
    qn = emb_q * jax.lax.rsqrt(
        jnp.maximum(jnp.sum(emb_q * emb_q, axis=-1, keepdims=True), eps))
    kn = emb_k * jax.lax.rsqrt(
        jnp.maximum(jnp.sum(emb_k * emb_k, axis=-1, keepdims=True), eps))
    kn_ref[...] = kn.astype(kn_ref.dtype)        # unit-norm bf16 keys, ready to enqueue

    qn = qn * scale
    qn_ref[...] = qn

    # positive logits directly from paired rows (no iota / where)
    diag_ref[...] = jnp.sum(qn * kn, axis=-1, keepdims=True)

    # in-batch scores (B, B): contract last dims, no transpose materialized
    s_in = jax.lax.dot_general(qn, kn, (((1,), (1,)), ((), ())),
                               preferred_element_type=jnp.float32)
    m0 = jnp.max(s_in, axis=-1, keepdims=True)
    m0_ref[...] = m0
    l0_ref[...] = jnp.sum(jnp.exp(s_in - m0), axis=-1, keepdims=True)


def encode_and_inbatch(pooled_q, pooled_k, w_q, b_q, w_k, b_k, scale, eps=1e-24):
    B, H = pooled_q.shape
    D = w_q.shape[1]
    return pl.pallas_call(
        functools.partial(_encode_kernel, scale=float(scale), eps=float(eps)),
        out_shape=(jax.ShapeDtypeStruct((B, D), jnp.float32),    # emb_k
                   jax.ShapeDtypeStruct((B, D), jnp.bfloat16),   # kn (unit-norm, enqueue)
                   jax.ShapeDtypeStruct((B, D), jnp.float32),    # qn * scale
                   jax.ShapeDtypeStruct((B, 1), jnp.float32),    # diag (positive logits)
                   jax.ShapeDtypeStruct((B, 1), jnp.float32),    # m0
                   jax.ShapeDtypeStruct((B, 1), jnp.float32)),   # l0
        grid=(1,),
        in_specs=[pl.BlockSpec((B, H), lambda i: (0, 0)),
                  pl.BlockSpec((B, H), lambda i: (0, 0)),
                  pl.BlockSpec((H, D), lambda i: (0, 0)),
                  pl.BlockSpec((1, D), lambda i: (0, 0)),
                  pl.BlockSpec((H, D), lambda i: (0, 0)),
                  pl.BlockSpec((1, D), lambda i: (0, 0))],
        out_specs=(pl.BlockSpec((B, D), lambda i: (0, 0)),
                   pl.BlockSpec((B, D), lambda i: (0, 0)),
                   pl.BlockSpec((B, D), lambda i: (0, 0)),
                   pl.BlockSpec((B, 1), lambda i: (0, 0)),
                   pl.BlockSpec((B, 1), lambda i: (0, 0)),
                   pl.BlockSpec((B, 1), lambda i: (0, 0))),
        compiler_params=pltpu.CompilerParams(dimension_semantics=("arbitrary",)),
    )(pooled_q, pooled_k, w_q, b_q, w_k, b_k)


# ----------------------------------------------------------------------------
# Kernel 3: streamed online logsumexp over the bf16 unit-norm queue.
# Grid = (NUM_LSE_SPLITS "parallel", tiles-per-split "arbitrary").
# Occupancy n_queue arrives via scalar prefetch; dead tiles are compute-gated.
# ----------------------------------------------------------------------------
def _queue_lse_kernel(nq_ref, qn_ref, queue_ref, m_out_ref, l_out_ref,
                      m_sc, l_sc, *, tile_n):
    c = pl.program_id(0)
    t = pl.program_id(1)
    n_half = pl.num_programs(1)

    @pl.when(t == 0)
    def _init():
        m_sc[...] = jnp.full(m_sc.shape, -jnp.inf, m_sc.dtype)
        l_sc[...] = jnp.zeros(l_sc.shape, l_sc.dtype)

    nq = nq_ref[0]
    start = (c * n_half + t) * tile_n

    @pl.when(start < nq)
    def _update():
        # queue already stores L2-normalized keys -> cosine sim == dot product
        kq = queue_ref[...].astype(jnp.float32)                        # (tile_n, D)
        s = jax.lax.dot_general(qn_ref[...], kq, (((1,), (1,)), ((), ())),
                                preferred_element_type=jnp.float32)    # (B, tile_n)
        # mask trailing columns of the (single) partial tile; full tiles pass all-true
        col = jax.lax.broadcasted_iota(jnp.int32, s.shape, 1)
        s = jnp.where(col < nq - start, s, -jnp.inf)
        m_prev = m_sc[...]
        m_new = jnp.maximum(m_prev, jnp.max(s, axis=-1, keepdims=True))
        l_sc[...] = (jnp.exp(m_prev - m_new) * l_sc[...]
                     + jnp.sum(jnp.exp(s - m_new), axis=-1, keepdims=True))
        m_sc[...] = m_new

    @pl.when(t == n_half - 1)
    def _finalize():
        m_out_ref[...] = m_sc[...]
        l_out_ref[...] = l_sc[...]


def _queue_tiling(capacity, d, itemsize):
    """Rows per streamed tile: multiple of 8, ~1 MiB, divides capacity/NUM_LSE_SPLITS."""
    per_split = capacity // NUM_LSE_SPLITS
    tile_n = max(8, min(per_split, ((1 << 20) // max(1, d * itemsize)) // 8 * 8))
    while per_split % tile_n:
        tile_n -= 8
    return tile_n, per_split // tile_n


def make_queue_buffer(q_size, d, dtype=jnp.bfloat16):
    """Fixed-capacity ring buffer holding L2-normalized key embeddings."""
    cap = _round_up(max(int(q_size), 1), 8 * NUM_LSE_SPLITS)
    return jnp.zeros((cap, d), dtype)


def queue_lse(qn, queue_buf, n_queue):
    B, D = qn.shape
    cap = queue_buf.shape[0]
    tile_n, n_half = _queue_tiling(cap, D, queue_buf.dtype.itemsize)

    queue_kwargs = {}
    if n_half >= 3:                       # deepen the pipeline only when it can help
        queue_kwargs["pipeline_mode"] = pl.Buffered(3)

    return pl.pallas_call(
        functools.partial(_queue_lse_kernel, tile_n=int(tile_n)),
        out_shape=(jax.ShapeDtypeStruct((NUM_LSE_SPLITS, B, 1), jnp.float32),
                   jax.ShapeDtypeStruct((NUM_LSE_SPLITS, B, 1), jnp.float32)),
        grid_spec=pltpu.PrefetchScalarGridSpec(
            num_scalar_prefetch=1,                                       # n_queue -> SMEM
            grid=(NUM_LSE_SPLITS, n_half),
            in_specs=[
                pl.BlockSpec((B, D), lambda c, t, nq: (0, 0)),           # qn (resident)
                pl.BlockSpec((tile_n, D), lambda c, t, nq: (c * n_half + t, 0),
                             **queue_kwargs),                            # queue stream
            ],
            out_specs=(
                pl.BlockSpec((None, B, 1), lambda c, t, nq: (c, 0, 0)),  # per-split m
                pl.BlockSpec((None, B, 1), lambda c, t, nq: (c, 0, 0)),  # per-split l
            ),
            scratch_shapes=[pltpu.VMEM((B, 1), jnp.float32),             # running max m
                            pltpu.VMEM((B, 1), jnp.float32)],            # running sum l
        ),
        compiler_params=pltpu.CompilerParams(
            dimension_semantics=("parallel", "arbitrary")),
    )(n_queue, qn, queue_buf)


# ----------------------------------------------------------------------------
# Full forward (glue): momentum update -> encode -> streamed queue LSE -> loss
# ----------------------------------------------------------------------------
@functools.partial(jax.jit, static_argnames=("scale", "gamma"))
def moco_forward(tokens_q, tokens_k, params_q, params_k, queue_buf, n_queue, *,
                 scale, gamma):
    B, S, H = tokens_q.shape
    D = params_q["w"].shape[1]

    # 1. momentum update (f32 master weights): Pallas for the matrix, JAX for bias.
    wk_new = momentum_update(params_q["w"], params_k["w"], gamma)
    bk_new = gamma * params_k["b"] + (1.0 - gamma) * params_q["b"]

    # 2. mean-pool "encoder" front-end: tokens -> (B, H); projection stays (B,H)@(H,D).
    pooled_q = jnp.mean(tokens_q, axis=1)
    pooled_k = jnp.mean(tokens_k, axis=1)

    # 3. encode + in-batch cosine scores + LSE seed (one small Pallas call).
    emb_k, kn_bf16, qn, diag, m0, l0 = encode_and_inbatch(
        pooled_q, pooled_k,
        params_q["w"], params_q["b"].reshape(1, D),
        wk_new, bk_new.reshape(1, D), scale)

    # 4. stream the bf16 unit-norm queue; merge per-split LSE partials here.
    if queue_buf is not None and queue_buf.shape[0] > 0:
        nq = jnp.asarray(n_queue, jnp.int32).reshape(1)
        m_p, l_p = queue_lse(qn, queue_buf, nq)
        m_all = jnp.maximum(m0, jnp.max(m_p, axis=0))
        l_all = l0 * jnp.exp(m0 - m_all) + jnp.sum(l_p * jnp.exp(m_p - m_all), axis=0)
    else:
        m_all, l_all = m0, l0

    lse = m_all + jnp.log(l_all)
    loss = jnp.mean(lse - diag)
    # TODO(synk): host-side ring-buffer bookkeeping (enqueue kn_bf16 / advance
    # n_queue) and the full transformer encoder stay outside the kernels.
    return loss, (wk_new, bk_new), emb_k, kn_bf16


if __name__ == "__main__":
    B, S, H, D = 8, 8, 32, 128       # batch, seq, hidden, embedding dim
    Q_SIZE = 128                     # queue capacity (module's q_size)
    Q_NEG = 24                       # current occupancy (< q_size)
    SCALE = 20.0
    GAMMA = 0.99

    key = jax.random.PRNGKey(0)
    k1, k2, k3, k4, k5 = jax.random.split(key, 5)

    w_q = jax.random.normal(k1, (H, D), jnp.float32) * 0.05
    b_q = jax.random.normal(k2, (D,), jnp.float32) * 0.01
    params_q = {"w": w_q, "b": b_q}
    params_k = {"w": w_q + 0.01, "b": b_q - 0.01}     # drifted momentum copy

    tokens_q = jax.random.normal(k3, (B, S, H), jnp.float32)
    tokens_k = jax.random.normal(k4, (B, S, H), jnp.float32)

    # fixed-capacity bf16 ring buffer holding L2-normalized negatives
    queue_buf = make_queue_buffer(Q_SIZE, D)
    q_raw = jax.random.normal(k5, (Q_NEG, D), jnp.float32)
    q_norm = q_raw / jnp.linalg.norm(q_raw, axis=-1, keepdims=True)
    queue_buf = queue_buf.at[:Q_NEG].set(q_norm.astype(queue_buf.dtype))
    n_queue = jnp.array([Q_NEG], jnp.int32)

    loss, (wk_new, bk_new), emb_k, kn_bf16 = moco_forward(
        tokens_q, tokens_k, params_q, params_k, queue_buf, n_queue,
        scale=SCALE, gamma=GAMMA)
    loss = jax.block_until_ready(loss)

    # Pure-JAX reference of the full forward.
    def ref_all(tq, tk, pq, pk, qbuf, nq):
        wk = GAMMA * pk["w"] + (1 - GAMMA) * pq["w"]
        bk = GAMMA * pk["b"] + (1 - GAMMA) * pq["b"]
        eq = tq.mean(1) @ pq["w"] + pq["b"]
        ek = tk.mean(1) @ wk + bk
        qn_ = eq / jnp.maximum(jnp.linalg.norm(eq, axis=-1, keepdims=True), 1e-12)
        kn_b = ek / jnp.maximum(jnp.linalg.norm(ek, axis=-1, keepdims=True), 1e-12)
        # queue stores L2-normalized keys, so cosine sim there == dot product
        kn_all = jnp.concatenate([kn_b, qbuf[:nq].astype(jnp.float32)], 0)
        s = qn_ @ kn_all.T * SCALE
        labels = jnp.arange(s.shape[0])
        lse = jax.scipy.special.logsumexp(s, axis=-1)
        return jnp.mean(lse - s[labels, labels]), wk, ek, kn_b

    ref_loss, ref_wk, ref_ek, ref_kn = ref_all(
        tokens_q, tokens_k, params_q, params_k, queue_buf, Q_NEG)

    assert jnp.allclose(wk_new, ref_wk, rtol=1e-6, atol=1e-6), "momentum update mismatch"
    assert jnp.allclose(emb_k, ref_ek, rtol=1e-4, atol=1e-5), "key embeddings mismatch"
    assert jnp.allclose(kn_bf16.astype(jnp.float32), ref_kn, atol=1e-2), "unit-norm keys mismatch"
    assert jnp.allclose(loss, ref_loss, rtol=1e-4, atol=1e-4), (loss, ref_loss)

    print("KERNEL_OK")
</pallas_src>

<mosaic_0001>
module attributes {stable_mosaic.version = 11 : i64} {
  func.func @_momentum_update_kernel(%arg0: i32, %arg1: i32, %arg2: memref<32x128xf32, #tpu.memory_space<vmem>>, %arg3: memref<32x128xf32, #tpu.memory_space<vmem>>, %arg4: memref<32x128xf32, #tpu.memory_space<vmem>>) attributes {dimension_semantics = [#tpu.dimension_semantics<parallel>, #tpu.dimension_semantics<parallel>], iteration_bounds = array<i64: 1, 1>, scalar_prefetch = 0 : i64, scratch_operands = 0 : i64, tpu.core_type = #tpu.core_type<tc>, window_params = [{transform_indices = @transform_0, window_bounds = array<i64: 32, 128>}, {transform_indices = @transform_1, window_bounds = array<i64: 32, 128>}, {transform_indices = @transform_2, window_bounds = array<i64: 32, 128>}]} {
    %c0 = arith.constant 0 : index
    %c0_0 = arith.constant 0 : index
    %0 = vector.load %arg2[%c0, %c0_0] : memref<32x128xf32, #tpu.memory_space<vmem>>, vector<32x128xf32>
    %c0_1 = arith.constant 0 : index
    %c0_2 = arith.constant 0 : index
    %1 = vector.load %arg3[%c0_1, %c0_2] : memref<32x128xf32, #tpu.memory_space<vmem>>, vector<32x128xf32>
    %cst = arith.constant 9.900000e-01 : f32
    %2 = vector.broadcast %cst : f32 to vector<32x128xf32>
    %3 = arith.mulf %2, %1 : vector<32x128xf32>
    %cst_3 = arith.constant 0.00999999977 : f32
    %4 = vector.broadcast %cst_3 : f32 to vector<32x128xf32>
    %5 = arith.mulf %4, %0 : vector<32x128xf32>
    %6 = arith.addf %3, %5 : vector<32x128xf32>
    %c0_4 = arith.constant 0 : index
    %c0_5 = arith.constant 0 : index
    %7 = vector.load %arg4[%c0_4, %c0_5] : memref<32x128xf32, #tpu.memory_space<vmem>>, vector<32x128xf32>
    tpu.vector_store %arg4[%c0_4, %c0_5], %6 {strides = array<i32>} : memref<32x128xf32, #tpu.memory_space<vmem>>, vector<32x128xf32>,
    return
  }
  func.func @transform_0(%arg0: i32, %arg1: i32) -> (i32, i32) {
    %c0_i32 = arith.constant 0 : i32
    return %arg0, %arg1 : i32, i32
  }
  func.func @transform_1(%arg0: i32, %arg1: i32) -> (i32, i32) {
    %c0_i32 = arith.constant 0 : i32
    return %arg0, %arg1 : i32, i32
  }
  func.func @transform_2(%arg0: i32, %arg1: i32) -> (i32, i32) {
    %c0_i32 = arith.constant 0 : i32
    return %arg0, %arg1 : i32, i32
  }
}

module attributes {stable_mosaic.version = 11 : i64} {
  func.func @_queue_lse_kernel(%arg0: i32, %arg1: i32, %arg2: memref<1xi32, #tpu.memory_space<smem>>, %arg3: memref<8x128xf32, #tpu.memory_space<vmem>>, %arg4: memref<64x128xbf16, #tpu.memory_space<vmem>>, %arg5: memref<1x8x1xf32, #tpu.memory_space<vmem>>, %arg6: memref<1x8x1xf32, #tpu.memory_space<vmem>>, %arg7: memref<8x1xf32, #tpu.memory_space<vmem>>, %arg8: memref<8x1xf32, #tpu.memory_space<vmem>>) attributes {dimension_semantics = [#tpu.dimension_semantics<parallel>, #tpu.dimension_semantics<arbitrary>], iteration_bounds = array<i64: 2, 1>, scalar_prefetch = 1 : i64, scratch_operands = 2 : i64, tpu.core_type = #tpu.core_type<tc>, window_params = [{pipeline_mode = #tpu.pipeline_mode<synchronous>, transform_indices = @transform_0, window_bounds = array<i64: 8, 128>}, {transform_indices = @transform_1, window_bounds = array<i64: 64, 128>}, {transform_indices = @transform_2, window_bounds = array<i64: 1, 8, 1>}, {transform_indices = @transform_3, window_bounds = array<i64: 1, 8, 1>}]} {
    %c0_i32 = arith.constant 0 : i32
    %0 = arith.cmpi eq, %arg1, %c0_i32 : i32
    %1 = arith.extui %0 : i1 to i32
    %c0_i32_0 = arith.constant 0 : i32
    %2 = arith.cmpi ne, %1, %c0_i32_0 : i32
    scf.if %2 {
      %cst = arith.constant 0xFF800000 : f32
      %13 = vector.broadcast %cst : f32 to vector<8x1xf32>
      %c0_4 = arith.constant 0 : index
      %c0_5 = arith.constant 0 : index
      %14 = vector.load %arg7[%c0_4, %c0_5] : memref<8x1xf32, #tpu.memory_space<vmem>>, vector<8x1xf32>
      tpu.vector_store %arg7[%c0_4, %c0_5], %13 {strides = array<i32>} : memref<8x1xf32, #tpu.memory_space<vmem>>, vector<8x1xf32>,
      %cst_6 = arith.constant 0.000000e+00 : f32
      %15 = vector.broadcast %cst_6 : f32 to vector<8x1xf32>
      %c0_7 = arith.constant 0 : index
      %c0_8 = arith.constant 0 : index
      %16 = vector.load %arg8[%c0_7, %c0_8] : memref<8x1xf32, #tpu.memory_space<vmem>>, vector<8x1xf32>
      tpu.vector_store %arg8[%c0_7, %c0_8], %15 {strides = array<i32>} : memref<8x1xf32, #tpu.memory_space<vmem>>, vector<8x1xf32>,
    } else {
    }
    %c0 = arith.constant 0 : index
    %3 = memref.load %arg2[%c0] : memref<1xi32, #tpu.memory_space<smem>>
    %c1_i32 = arith.constant 1 : i32
    %4 = arith.muli %arg0, %c1_i32 : i32
    %5 = arith.addi %4, %arg1 : i32
    %c64_i32 = arith.constant 64 : i32
    %6 = arith.muli %5, %c64_i32 : i32
    %7 = arith.cmpi slt, %6, %3 : i32
    %8 = arith.extui %7 : i1 to i32
    %c0_i32_1 = arith.constant 0 : i32
    %9 = arith.cmpi ne, %8, %c0_i32_1 : i32
    scf.if %9 {
      %c0_4 = arith.constant 0 : index
      %c0_5 = arith.constant 0 : index
      %13 = vector.load %arg4[%c0_4, %c0_5] : memref<64x128xbf16, #tpu.memory_space<vmem>>, vector<64x128xbf16>
      %14 = arith.extf %13 : vector<64x128xbf16> to vector<64x128xf32>
      %c0_6 = arith.constant 0 : index
      %c0_7 = arith.constant 0 : index
      %15 = vector.load %arg3[%c0_6, %c0_7] : memref<8x128xf32, #tpu.memory_space<vmem>>, vector<8x128xf32>
      %cst = arith.constant dense<0.000000e+00> : vector<8x64xf32>
      %16 = tpu.matmul %15, %14, %cst {dimension_numbers = #tpu.dot_dimension_numbers<[1], [1], [0], [0], [0, 0, 1, 0], [], []>} : vector<8x128xf32>, vector<64x128xf32>, vector<8x64xf32> -> vector<8x64xf32>
      %17 = tpu.iota {dimensions = array<i32: 1>} : vector<8x64xi32>
      %18 = arith.subi %3, %6 : i32
      %19 = vector.broadcast %18 : i32 to vector<8x64xi32>
      %20 = arith.cmpi slt, %17, %19 : vector<8x64xi32>
      %cst_8 = arith.constant 0xFF800000 : f32
      %21 = vector.broadcast %cst_8 : f32 to vector<8x64xf32>
      %22 = arith.select %20, %16, %21 : vector<8x64xi1>, vector<8x64xf32>
      %c0_9 = arith.constant 0 : index
      %c0_10 = arith.constant 0 : index
      %23 = vector.load %arg7[%c0_9, %c0_10] : memref<8x1xf32, #tpu.memory_space<vmem>>, vector<8x1xf32>
      %cst_11 = arith.constant dense<0xFF800000> : vector<8xf32>
      %24 = vector.multi_reduction <maximumf>, %22, %cst_11 [1] : vector<8x64xf32> to vector<8xf32>
      %25 = vector.shape_cast %24 : vector<8xf32> to vector<8x1xf32>
      %26 = arith.maximumf %23, %25 : vector<8x1xf32>
      %27 = arith.subf %23, %26 : vector<8x1xf32>
      %28 = math.exp %27 : vector<8x1xf32>
      %c0_12 = arith.constant 0 : index
      %c0_13 = arith.constant 0 : index
      %29 = vector.load %arg8[%c0_12, %c0_13] : memref<8x1xf32, #tpu.memory_space<vmem>>, vector<8x1xf32>
      %30 = arith.mulf %28, %29 : vector<8x1xf32>
      %31 = vector.broadcast %26 : vector<8x1xf32> to vector<8x64xf32>
      %32 = arith.subf %22, %31 : vector<8x64xf32>
      %33 = math.exp %32 : vector<8x64xf32>
      %cst_14 = arith.constant dense<0.000000e+00> : vector<8xf32>
      %34 = vector.multi_reduction <add>, %33, %cst_14 [1] : vector<8x64xf32> to vector<8xf32>
      %35 = vector.shape_cast %34 : vector<8xf32> to vector<8x1xf32>
      %36 = arith.addf %30, %35 : vector<8x1xf32>
      %c0_15 = arith.constant 0 : index
      %c0_16 = arith.constant 0 : index
      %37 = vector.load %arg8[%c0_15, %c0_16] : memref<8x1xf32, #tpu.memory_space<vmem>>, vector<8x1xf32>
      tpu.vector_store %arg8[%c0_15, %c0_16], %36 {strides = array<i32>} : memref<8x1xf32, #tpu.memory_space<vmem>>, vector<8x1xf32>,
      %c0_17 = arith.constant 0 : index
      %c0_18 = arith.constant 0 : index
      %38 = vector.load %arg7[%c0_17, %c0_18] : memref<8x1xf32, #tpu.memory_space<vmem>>, vector<8x1xf32>
      tpu.vector_store %arg7[%c0_17, %c0_18], %26 {strides = array<i32>} : memref<8x1xf32, #tpu.memory_space<vmem>>, vector<8x1xf32>,
    } else {
    }
    %c0_i32_2 = arith.constant 0 : i32
    %10 = arith.cmpi eq, %arg1, %c0_i32_2 : i32
    %11 = arith.extui %10 : i1 to i32
    %c0_i32_3 = arith.constant 0 : i32
    %12 = arith.cmpi ne, %11, %c0_i32_3 : i32
    scf.if %12 {
      %c0_4 = arith.constant 0 : index
      %c0_5 = arith.constant 0 : index
      %13 = vector.load %arg7[%c0_4, %c0_5] : memref<8x1xf32, #tpu.memory_space<vmem>>, vector<8x1xf32>
      %c0_6 = arith.constant 0 : index
      %c0_7 = arith.constant 0 : index
      %c0_8 = arith.constant 0 : index
      %14 = vector.load %arg5[%c0_6, %c0_7, %c0_8] : memref<1x8x1xf32, #tpu.memory_space<vmem>>, vector<1x8x1xf32>
      %15 = vector.shape_cast %14 : vector<1x8x1xf32> to vector<8x1xf32>
      %16 = vector.shape_cast %13 : vector<8x1xf32> to vector<1x8x1xf32>
      tpu.vector_store %arg5[%c0_6, %c0_7, %c0_8], %16 {strides = array<i32>} : memref<1x8x1xf32, #tpu.memory_space<vmem>>, vector<1x8x1xf32>,
      %c0_9 = arith.constant 0 : index
      %c0_10 = arith.constant 0 : index
      %17 = vector.load %arg8[%c0_9, %c0_10] : memref<8x1xf32, #tpu.memory_space<vmem>>, vector<8x1xf32>
      %c0_11 = arith.constant 0 : index
      %c0_12 = arith.constant 0 : index
      %c0_13 = arith.constant 0 : index
      %18 = vector.load %arg6[%c0_11, %c0_12, %c0_13] : memref<1x8x1xf32, #tpu.memory_space<vmem>>, vector<1x8x1xf32>
      %19 = vector.shape_cast %18 : vector<1x8x1xf32> to vector<8x1xf32>
      %20 = vector.shape_cast %17 : vector<8x1xf32> to vector<1x8x1xf32>
      tpu.vector_store %arg6[%c0_11, %c0_12, %c0_13], %20 {strides = array<i32>} : memref<1x8x1xf32, #tpu.memory_space<vmem>>, vector<1x8x1xf32>,
    } else {
    }
    return
  }
  func.func @transform_0(%arg0: i32, %arg1: i32, %arg2: memref<1xi32, #tpu.memory_space<smem>>) -> (i32, i32) {
    %c0_i32 = arith.constant 0 : i32
    %c0_i32_0 = arith.constant 0 : i32
    %c0_i32_1 = arith.constant 0 : i32
    return %c0_i32, %c0_i32_0 : i32, i32
  }
  func.func @transform_1(%arg0: i32, %arg1: i32, %arg2: memref<1xi32, #tpu.memory_space<smem>>) -> (i32, i32) {
    %c1_i32 = arith.constant 1 : i32
    %0 = arith.muli %arg0, %c1_i32 : i32
    %1 = arith.addi %0, %arg1 : i32
    %c0_i32 = arith.constant 0 : i32
    %c0_i32_0 = arith.constant 0 : i32
    return %1, %c0_i32 : i32, i32
  }
  func.func @transform_2(%arg0: i32, %arg1: i32, %arg2: memref<1xi32, #tpu.memory_space<smem>>) -> (i32, i32, i32) {
    %c0_i32 = arith.constant 0 : i32
    %c0_i32_0 = arith.constant 0 : i32
    %c0_i32_1 = arith.constant 0 : i32
    return %arg0, %c0_i32, %c0_i32_0 : i32, i32, i32
  }
  func.func @transform_3(%arg0: i32, %arg1: i32, %arg2: memref<1xi32, #tpu.memory_space<smem>>) -> (i32, i32, i32) {
    %c0_i32 = arith.constant 0 : i32
    %c0_i32_0 = arith.constant 0 : i32
    %c0_i32_1 = arith.constant 0 : i32
    return %arg0, %c0_i32, %c0_i32_0 : i32, i32, i32
  }
}

module attributes {stable_mosaic.version = 11 : i64} {
  func.func @_encode_kernel(%arg0: i32, %arg1: memref<8x32xf32, #tpu.memory_space<vmem>>, %arg2: memref<8x32xf32, #tpu.memory_space<vmem>>, %arg3: memref<32x128xf32, #tpu.memory_space<vmem>>, %arg4: memref<1x128xf32, #tpu.memory_space<vmem>>, %arg5: memref<32x128xf32, #tpu.memory_space<vmem>>, %arg6: memref<1x128xf32, #tpu.memory_space<vmem>>, %arg7: memref<8x128xf32, #tpu.memory_space<vmem>>, %arg8: memref<8x128xbf16, #tpu.memory_space<vmem>>, %arg9: memref<8x128xf32, #tpu.memory_space<vmem>>, %arg10: memref<8x1xf32, #tpu.memory_space<vmem>>, %arg11: memref<8x1xf32, #tpu.memory_space<vmem>>, %arg12: memref<8x1xf32, #tpu.memory_space<vmem>>) attributes {dimension_semantics = [#tpu.dimension_semantics<arbitrary>], iteration_bounds = array<i64: 1>, scalar_prefetch = 0 : i64, scratch_operands = 0 : i64, tpu.core_type = #tpu.core_type<tc>, window_params = [{pipeline_mode = #tpu.pipeline_mode<synchronous>, transform_indices = @transform_0, window_bounds = array<i64: 8, 32>}, {pipeline_mode = #tpu.pipeline_mode<synchronous>, transform_indices = @transform_1, window_bounds = array<i64: 8, 32>}, {pipeline_mode = #tpu.pipeline_mode<synchronous>, transform_indices = @transform_2, window_bounds = array<i64: 32, 128>}, {pipeline_mode = #tpu.pipeline_mode<synchronous>, transform_indices = @transform_3, window_bounds = array<i64: 1, 128>}, {pipeline_mode = #tpu.pipeline_mode<synchronous>, transform_indices = @transform_4, window_bounds = array<i64: 32, 128>}, {pipeline_mode = #tpu.pipeline_mode<synchronous>, transform_indices = @transform_5, window_bounds = array<i64: 1, 128>}, {pipeline_mode = #tpu.pipeline_mode<synchronous>, transform_indices = @transform_6, window_bounds = array<i64: 8, 128>}, {pipeline_mode = #tpu.pipeline_mode<synchronous>, transform_indices = @transform_7, window_bounds = array<i64: 8, 128>}, {pipeline_mode = #tpu.pipeline_mode<synchronous>, transform_indices = @transform_8, window_bounds = array<i64: 8, 128>}, {pipeline_mode = #tpu.pipeline_mode<synchronous>, transform_indices = @transform_9, window_bounds = array<i64: 8, 1>}, {pipeline_mode = #tpu.pipeline_mode<synchronous>, transform_indices = @transform_10, window_bounds = array<i64: 8, 1>}, {pipeline_mode = #tpu.pipeline_mode<synchronous>, transform_indices = @transform_11, window_bounds = array<i64: 8, 1>}]} {
    %c0 = arith.constant 0 : index
    %c0_0 = arith.constant 0 : index
    %0 = vector.load %arg1[%c0, %c0_0] : memref<8x32xf32, #tpu.memory_space<vmem>>, vector<8x32xf32>
    %c0_1 = arith.constant 0 : index
    %c0_2 = arith.constant 0 : index
    %1 = vector.load %arg3[%c0_1, %c0_2] : memref<32x128xf32, #tpu.memory_space<vmem>>, vector<32x128xf32>
    %cst = arith.constant dense<0.000000e+00> : vector<8x128xf32>
    %2 = tpu.matmul %0, %1, %cst {dimension_numbers = #tpu.dot_dimension_numbers<[1], [0], [0], [1], [0, 0, 1, 1], [], []>} : vector<8x32xf32>, vector<32x128xf32>, vector<8x128xf32> -> vector<8x128xf32>
    %c0_3 = arith.constant 0 : index
    %c0_4 = arith.constant 0 : index
    %3 = vector.load %arg4[%c0_3, %c0_4] : memref<1x128xf32, #tpu.memory_space<vmem>>, vector<1x128xf32>
    %4 = vector.broadcast %3 : vector<1x128xf32> to vector<8x128xf32>
    %5 = arith.addf %2, %4 : vector<8x128xf32>
    %c0_5 = arith.constant 0 : index
    %c0_6 = arith.constant 0 : index
    %6 = vector.load %arg2[%c0_5, %c0_6] : memref<8x32xf32, #tpu.memory_space<vmem>>, vector<8x32xf32>
    %c0_7 = arith.constant 0 : index
    %c0_8 = arith.constant 0 : index
    %7 = vector.load %arg5[%c0_7, %c0_8] : memref<32x128xf32, #tpu.memory_space<vmem>>, vector<32x128xf32>
    %cst_9 = arith.constant dense<0.000000e+00> : vector<8x128xf32>
    %8 = tpu.matmul %6, %7, %cst_9 {dimension_numbers = #tpu.dot_dimension_numbers<[1], [0], [0], [1], [0, 0, 1, 1], [], []>} : vector<8x32xf32>, vector<32x128xf32>, vector<8x128xf32> -> vector<8x128xf32>
    %c0_10 = arith.constant 0 : index
    %c0_11 = arith.constant 0 : index
    %9 = vector.load %arg6[%c0_10, %c0_11] : memref<1x128xf32, #tpu.memory_space<vmem>>, vector<1x128xf32>
    %10 = vector.broadcast %9 : vector<1x128xf32> to vector<8x128xf32>
    %11 = arith.addf %8, %10 : vector<8x128xf32>
    %c0_12 = arith.constant 0 : index
    %c0_13 = arith.constant 0 : index
    %12 = vector.load %arg7[%c0_12, %c0_13] : memref<8x128xf32, #tpu.memory_space<vmem>>, vector<8x128xf32>
    tpu.vector_store %arg7[%c0_12, %c0_13], %11 {strides = array<i32>} : memref<8x128xf32, #tpu.memory_space<vmem>>, vector<8x128xf32>,
    %13 = arith.mulf %5, %5 : vector<8x128xf32>
    %cst_14 = arith.constant dense<0.000000e+00> : vector<8xf32>
    %14 = vector.multi_reduction <add>, %13, %cst_14 [1] : vector<8x128xf32> to vector<8xf32>
    %15 = vector.shape_cast %14 : vector<8xf32> to vector<8x1xf32>
    %cst_15 = arith.constant 1.000000e-24 : f32
    %16 = vector.broadcast %cst_15 : f32 to vector<8x1xf32>
    %17 = arith.maximumf %15, %16 : vector<8x1xf32>
    %18 = math.rsqrt %17 : vector<8x1xf32>
    %19 = vector.broadcast %18 : vector<8x1xf32> to vector<8x128xf32>
    %20 = arith.mulf %5, %19 : vector<8x128xf32>
    %21 = arith.mulf %11, %11 : vector<8x128xf32>
    %cst_16 = arith.constant dense<0.000000e+00> : vector<8xf32>
    %22 = vector.multi_reduction <add>, %21, %cst_16 [1] : vector<8x128xf32> to vector<8xf32>
    %23 = vector.shape_cast %22 : vector<8xf32> to vector<8x1xf32>
    %cst_17 = arith.constant 1.000000e-24 : f32
    %24 = vector.broadcast %cst_17 : f32 to vector<8x1xf32>
    %25 = arith.maximumf %23, %24 : vector<8x1xf32>
    %26 = math.rsqrt %25 : vector<8x1xf32>
    %27 = vector.broadcast %26 : vector<8x1xf32> to vector<8x128xf32>
    %28 = arith.mulf %11, %27 : vector<8x128xf32>
    %29 = arith.truncf %28 : vector<8x128xf32> to vector<8x128xbf16>
    %c0_18 = arith.constant 0 : index
    %c0_19 = arith.constant 0 : index
    %30 = vector.load %arg8[%c0_18, %c0_19] : memref<8x128xbf16, #tpu.memory_space<vmem>>, vector<8x128xbf16>
    tpu.vector_store %arg8[%c0_18, %c0_19], %29 {strides = array<i32>} : memref<8x128xbf16, #tpu.memory_space<vmem>>, vector<8x128xbf16>,
    %cst_20 = arith.constant 2.000000e+01 : f32
    %31 = vector.broadcast %cst_20 : f32 to vector<8x128xf32>
    %32 = arith.mulf %20, %31 : vector<8x128xf32>
    %c0_21 = arith.constant 0 : index
    %c0_22 = arith.constant 0 : index
    %33 = vector.load %arg9[%c0_21, %c0_22] : memref<8x128xf32, #tpu.memory_space<vmem>>, vector<8x128xf32>
    tpu.vector_store %arg9[%c0_21, %c0_22], %32 {strides = array<i32>} : memref<8x128xf32, #tpu.memory_space<vmem>>, vector<8x128xf32>,
    %34 = arith.mulf %32, %28 : vector<8x128xf32>
    %cst_23 = arith.constant dense<0.000000e+00> : vector<8xf32>
    %35 = vector.multi_reduction <add>, %34, %cst_23 [1] : vector<8x128xf32> to vector<8xf32>
    %36 = vector.shape_cast %35 : vector<8xf32> to vector<8x1xf32>
    %c0_24 = arith.constant 0 : index
    %c0_25 = arith.constant 0 : index
    %37 = vector.load %arg10[%c0_24, %c0_25] : memref<8x1xf32, #tpu.memory_space<vmem>>, vector<8x1xf32>
    tpu.vector_store %arg10[%c0_24, %c0_25], %36 {strides = array<i32>} : memref<8x1xf32, #tpu.memory_space<vmem>>, vector<8x1xf32>,
    %cst_26 = arith.constant dense<0.000000e+00> : vector<8x8xf32>
    %38 = tpu.matmul %32, %28, %cst_26 {dimension_numbers = #tpu.dot_dimension_numbers<[1], [1], [0], [0], [0, 0, 1, 0], [], []>} : vector<8x128xf32>, vector<8x128xf32>, vector<8x8xf32> -> vector<8x8xf32>
    %cst_27 = arith.constant dense<0xFF800000> : vector<8xf32>
    %39 = vector.multi_reduction <maximumf>, %38, %cst_27 [1] : vector<8x8xf32> to vector<8xf32>
    %40 = vector.shape_cast %39 : vector<8xf32> to vector<8x1xf32>
    %c0_28 = arith.constant 0 : index
    %c0_29 = arith.constant 0 : index
    %41 = vector.load %arg11[%c0_28, %c0_29] : memref<8x1xf32, #tpu.memory_space<vmem>>, vector<8x1xf32>
    tpu.vector_store %arg11[%c0_28, %c0_29], %40 {strides = array<i32>} : memref<8x1xf32, #tpu.memory_space<vmem>>, vector<8x1xf32>,
    %42 = vector.broadcast %40 : vector<8x1xf32> to vector<8x8xf32>
    %43 = arith.subf %38, %42 : vector<8x8xf32>
    %44 = math.exp %43 : vector<8x8xf32>
    %cst_30 = arith.constant dense<0.000000e+00> : vector<8xf32>
    %45 = vector.multi_reduction <add>, %44, %cst_30 [1] : vector<8x8xf32> to vector<8xf32>
    %46 = vector.shape_cast %45 : vector<8xf32> to vector<8x1xf32>
    %c0_31 = arith.constant 0 : index
    %c0_32 = arith.constant 0 : index
    %47 = vector.load %arg12[%c0_31, %c0_32] : memref<8x1xf32, #tpu.memory_space<vmem>>, vector<8x1xf32>
    tpu.vector_store %arg12[%c0_31, %c0_32], %46 {strides = array<i32>} : memref<8x1xf32, #tpu.memory_space<vmem>>, vector<8x1xf32>,
    return
  }
  func.func @transform_0(%arg0: i32) -> (i32, i32) {
    %c0_i32 = arith.constant 0 : i32
    %c0_i32_0 = arith.constant 0 : i32
    %c0_i32_1 = arith.constant 0 : i32
    return %c0_i32, %c0_i32_0 : i32, i32
  }
  func.func @transform_1(%arg0: i32) -> (i32, i32) {
    %c0_i32 = arith.constant 0 : i32
    %c0_i32_0 = arith.constant 0 : i32
    %c0_i32_1 = arith.constant 0 : i32
    return %c0_i32, %c0_i32_0 : i32, i32
  }
  func.func @transform_2(%arg0: i32) -> (i32, i32) {
    %c0_i32 = arith.constant 0 : i32
    %c0_i32_0 = arith.constant 0 : i32
    %c0_i32_1 = arith.constant 0 : i32
    return %c0_i32, %c0_i32_0 : i32, i32
  }
  func.func @transform_3(%arg0: i32) -> (i32, i32) {
    %c0_i32 = arith.constant 0 : i32
    %c0_i32_0 = arith.constant 0 : i32
    %c0_i32_1 = arith.constant 0 : i32
    return %c0_i32, %c0_i32_0 : i32, i32
  }
  func.func @transform_4(%arg0: i32) -> (i32, i32) {
    %c0_i32 = arith.constant 0 : i32
    %c0_i32_0 = arith.constant 0 : i32
    %c0_i32_1 = arith.constant 0 : i32
    return %c0_i32, %c0_i32_0 : i32, i32
  }
  func.func @transform_5(%arg0: i32) -> (i32, i32) {
    %c0_i32 = arith.constant 0 : i32
    %c0_i32_0 = arith.constant 0 : i32
    %c0_i32_1 = arith.constant 0 : i32
    return %c0_i32, %c0_i32_0 : i32, i32
  }
  func.func @transform_6(%arg0: i32) -> (i32, i32) {
    %c0_i32 = arith.constant 0 : i32
    %c0_i32_0 = arith.constant 0 : i32
    %c0_i32_1 = arith.constant 0 : i32
    return %c0_i32, %c0_i32_0 : i32, i32
  }
  func.func @transform_7(%arg0: i32) -> (i32, i32) {
    %c0_i32 = arith.constant 0 : i32
    %c0_i32_0 = arith.constant 0 : i32
    %c0_i32_1 = arith.constant 0 : i32
    return %c0_i32, %c0_i32_0 : i32, i32
  }
  func.func @transform_8(%arg0: i32) -> (i32, i32) {
    %c0_i32 = arith.constant 0 : i32
    %c0_i32_0 = arith.constant 0 : i32
    %c0_i32_1 = arith.constant 0 : i32
    return %c0_i32, %c0_i32_0 : i32, i32
  }
  func.func @transform_9(%arg0: i32) -> (i32, i32) {
    %c0_i32 = arith.constant 0 : i32
    %c0_i32_0 = arith.constant 0 : i32
    %c0_i32_1 = arith.constant 0 : i32
    return %c0_i32, %c0_i32_0 : i32, i32
  }
  func.func @transform_10(%arg0: i32) -> (i32, i32) {
    %c0_i32 = arith.constant 0 : i32
    %c0_i32_0 = arith.constant 0 : i32
    %c0_i32_1 = arith.constant 0 : i32
    return %c0_i32, %c0_i32_0 : i32, i32
  }
  func.func @transform_11(%arg0: i32) -> (i32, i32) {
    %c0_i32 = arith.constant 0 : i32
    %c0_i32_0 = arith.constant 0 : i32
    %c0_i32_1 = arith.constant 0 : i32
    return %c0_i32, %c0_i32_0 : i32, i32
  }
}

</mosaic_0001>

<bundles_post_ra>
// kernel: moco_forward.3
= control target key start
LH: loop header
LB: loop body
LE: loop exit
PB: predicated region body
PF: predicated region fallthrough
CT: control target
= control target key end

     0   :  { %s90_s0 = inlined_call_operand.vmem [shape: f32[32,128], index: 0, kind: input, shape index: {}]   ;;  %s91_s1 = inlined_call_operand.vmem [shape: f32[32,128], index: 1, kind: input, shape index: {}, may-alias: {1,2}]   ;;  %s92_s2 = inlined_call_operand.vmem [shape: f32[32,128], index: 2, kind: output, shape index: {}, may-alias: {1,2}]  }
   0x1   :  { %v11_v0 = vld [vmem:[%s90_s0] sm:$0xff]  ;;  %v12_v2 = vld [vmem:[%s90_s0 + $0x8] sm:$0xff]  ;;  %v13_v6 = vld [vmem:[%s90_s0 + $0x10] sm:$0xff] }
   0x2   :  { %v15_v1 = vld [vmem:[%s91_s1] sm:$0xff]  ;;  %v23_v4 = vmul.f32 0.01, %v11_v0  ;;  %v16_v5 = vld [vmem:[%s91_s1 + $0x8] sm:$0xff]  ;;  %v24_v8 = vmul.f32 0.01, %v12_v2 }
   0x3   :  { %v19_v3 = vmul.f32 0.99, %v15_v1  ;;  %v20_v7 = vmul.f32 0.99, %v16_v5  ;;  %v17_v9 = vld [vmem:[%s91_s1 + $0x10] sm:$0xff]  ;;  %v14_v10 = vld [vmem:[%s90_s0 + $0x18] sm:$0xff] }
   0x4   :  { %v21_v12 = vmul.f32 0.99, %v17_v9  ;;  %v25_v13 = vmul.f32 0.01, %v13_v6  ;;  %v18_v14 = vld [vmem:[%s91_s1 + $0x18] sm:$0xff] }
   0x5   :  { %v27_v11 = vadd.f32 %v23_v4, %v19_v3  ;;  %v28_v15 = vadd.f32 %v24_v8, %v20_v7  ;;  %v22_v16 = vmul.f32 0.99, %v18_v14  ;;  %v26_v17 = vmul.f32 0.01, %v14_v10 }
   0x6   :  { %v29_v18 = vadd.f32 %v25_v13, %v21_v12 }
   0x7   :  { %31 = vst [vmem:[%s92_s2] sm:$0xff] %v27_v11  ;;  %32 = vst [vmem:[%s92_s2 + $0x8] sm:$0xff] %v28_v15  ;;  %v30_v19 = vadd.f32 %v26_v17, %v22_v16 }
   0x8   :  { %33 = vst [vmem:[%s92_s2 + $0x10] sm:$0xff] %v29_v18 }
   0x9   :  { %34 = vst [vmem:[%s92_s2 + $0x18] sm:$0xff] %v30_v19 }

// kernel: moco_forward.5
= control target key start
LH: loop header
LB: loop body
LE: loop exit
PB: predicated region body
PF: predicated region fallthrough
CT: control target
= control target key end

     0   :  { %s601_s17 = smov 0   ;;  %s603_s18 = smov 0   ;;  %s664_s0 = inlined_call_operand.<no memory space> [shape: s32[1], index: 0, kind: input, shape index: {}]   ;;  %s665_s1 = inlined_call_operand.vmem [shape: f32[8,128], index: 1, kind: input, shape index: {}]   ;;  %s666_s2 = inlined_call_operand.vmem [shape: bf16[128,128], index: 2, kind: input, shape index: {}]   ;;  %s667_s3 = inlined_call_operand.vmem [shape: f32[2,8,1], index: 3, kind: output, shape index: {0}]   ;;  %s668_s4 = inlined_call_operand.vmem [shape: f32[2,8,1], index: 4, kind: output, shape index: {1}]  }
   0x1   :  { %10 = sst [smem:[#allocation5]] %s664_s0  ;;  %s605_s19 = smov 0  }
   0x2 LB: > { %s28_s0 = sadd.s32 1, %s561_s18  ;;  %p440_p0 = scmp.ge.s32.totalorder %s565_s19, 1  ;;  %s565_s19 = sphi %s605_s19, %s16_s19   ;;  %s561_s18 = sphi %s603_s18, %s670_s18   ;;  %s557_s17 = sphi %s601_s17, %s669_s17  }
   0x3   : > { %p30_p1 = scmp.ge.s32.totalorder %s28_s0, 2  ;;  %p159_p2 = scmp.lt.s32.totalorder %s565_s19, 3 }
   0x5   : > { %s672_s0 = smov (%p30_p1, %s28_s0), 0  ;;  %p160_p3 = pnand %p440_p0, %p159_p2 }
   0x6   : > { %s441_s20 = sshll.u32 (!%p160_p3), %s557_s17, 3  ;;  %p195_p4 = scmp.lt.s32.totalorder (!%p160_p3), %s557_s17, 1  ;;  %vm207_vm0 = vcmask (!%p160_p3), 7168   ;;  %v567_v0 = vmov (!%p160_p3), -inf   ;;  %v568_v1 = vmov (!%p160_p3), 0.0  }
   0x7   : > { %163 = sbr.rel (%p160_p3) target bundleno = 705 (0x2c1), region = 28  ;;  %p189_p5 = scmp.lt.s32.totalorder (!%p160_p3), %s441_s20, 15  ;;  %208 = vst.msk [vmem:[#allocation2] sm:$0xff] (!%p160_p3), %vm207_vm0, %v567_v0  ;;  %209 = vst.msk [vmem:[#allocation3] sm:$0xff] (!%p160_p3), %vm207_vm0, %v568_v1 }
   0x8   : > { %s625_s21 = sld [smem:[#allocation5]] (!%p160_p3)  ;;  %s445_s24 = sshll.u32 (!%p160_p3), %s557_s17, 6 }
   0xe   : > { %s196_s22 = scalar_select %p195_p4, %s557_s17, 1 }
   0xf   : > { %s674_s20 = smov (!%p189_p5, %s441_s20), 15  ;;  %p446_p6 = scmp.ge.s32.totalorder %s445_s24, %s625_s21 }
  0x10   : > { %s443_s23 = sshll.u32 %s196_s22, 3  ;;  %s442_s25 = sshll.u32 %s674_s20, 2  ;;  %v569_v3 = vmov (!%p446_p6), 0.0|0.0   ;;  %vm570_vm1 = vmmov (!%p446_p6), 0   ;;  %v571_v4 = vmov (!%p446_p6), 0.0   ;;  %v233_v8 = vld [vmem:[%s665_s1] sm:$0xff] (!%p446_p6)  ;;  %v304_v9 = vlaneseq (!%p446_p6) }
  0x11   : > { %s632_s28 = scalar_lea.vmem %s667_s3, %s443_s23  ;;  %s192_s5 = scalar_lea.vmem %s666_s2, %s442_s25  ;;  %496 = vmatprep.subr.bf16.mxu0 (!%p446_p6), %v569_v3  ;;  %493 = vmatprep.mubr.msk.f32.mxu0 (!%p446_p6), %vm570_vm1, %v571_v4  ;;  %vm311_vm3 = vcmask (!%p446_p6), 523264   ;;  %v572_v16 = vmov (!%p446_p6), 0   ;;  %v310_v17 = vld [vmem:[#allocation2] sm:$0xff] (!%p446_p6)  ;;  %v319_v28 = vld [vmem:[#allocation3] sm:$0xff] (!%p446_p6) }
  0x12   : > { %s640_s8 = scalar_lea.vmem %s668_s4, %s443_s23  ;;  %216 = sbr.rel (%p446_p6) target bundleno = 697 (0x2b9), region = 36  ;;  %v450_v2 = vld [vmem:[%s192_s5] sm:$0xff] (!%p446_p6)   ;;  %v465_v5 = vld [vmem:[%s192_s5 + $0x8] sm:$0xff] (!%p446_p6)   ;;  %v466_v6 = vld [vmem:[%s192_s5 + $0x10] sm:$0xff] (!%p446_p6)   ;;  %v305_v10 = vand.u32 (!%p446_p6), 127, %v304_v9  ;;  %538 = vset.pattern.permute.xlu0 (!%p446_p6), %v572_v16 }
  0x13   : > { %498 = vmatpush3.bf16.xpose.msra.mxu0 (!%p446_p6), %v450_v2  ;;  %v467_v7 = vld [vmem:[%s192_s5 + $0x18] sm:$0xff] (!%p446_p6)   ;;  %s306_s11 = ssub.s32 (!%p446_p6), %s625_s21, %s445_s24 }
  0x14   : > { %499 = vmatprep.subr.bf16.mxu0 (!%p446_p6), %v569_v3  ;;  %v307_v11 = vstv (!%p446_p6), %s306_s11 }
  0x15   : > { %vm308_vm2 = vcmp.lt.s32.totalorder (!%p446_p6), %v305_v10, %v307_v11 }
  0x1b   : > { %501 = vmatpush3.bf16.xpose.msra.mxu0 %v465_v5 }
  0x1c   : > { %502 = vmatprep.subr.bf16.mxu0 %v569_v3 }
  0x23   : > { %504 = vmatpush3.bf16.xpose.msra.mxu0 %v466_v6 }
  0x24   : > { %505 = vmatprep.subr.bf16.mxu0 %v569_v3 }
  0x2b   : > { %507 = vmatpush3.bf16.xpose.msra.mxu0 %v467_v7 }
  0x32   : > { %494 = vmatmul.mubr.f32.vlgmr.msra.gmra.mrb[0].mxu0 %v233_v8 }
 0x105   : > { %v300_v12 = vpop.f32.mrb[0].mxu0 }
 0x106   : > { %v309_v13 = vsel %vm308_vm2, %v300_v12, -inf  ;;  %v495_v14 = vpop.f32.mrb[1].mxu0 }
 0x107   : > { %v312_v15 = vsel %vm311_vm3, %v309_v13, -inf }
 0x108   : > { %313 = vmax.xlane.f32.xlu0 %v312_v15 }
 0x195   : > { %v314_v18 = vpop.xlane.xlu0 %313 }
 0x196   : > { %v315_v19 = vmax.f32 %v310_v17, %v314_v18 }
 0x198   : > { %v316_v20 = vsub.f32 %v310_v17, %v315_v19  ;;  %335 = vst.msk [vmem:[#allocation2] sm:$0xff] %vm207_vm0, %v315_v19  ;;  %323 = vperm.xlu0 %538, %v315_v19  }
 0x19a   : > { %v317_v26 = vmul.f32 1.442695, %v316_v20 }
 0x217   : > { %v324_v21 = vpop.permute.xlu0 %323 }
 0x218   : > { %v326_v22 = vsub.f32 %v309_v13, %v324_v21 }
 0x21a   : > { %v327_v23 = vmul.f32 1.442695, %v326_v22 }
 0x21c   : > { %539 = vpow2.f32 %v327_v23 }
 0x21d   : > { %541 = vpow2.f32 %v317_v26 }
 0x226   : > { %v540_v24 = vpop.eup %539 }
 0x227   : > { %v329_v25 = vsel %vm311_vm3, %v540_v24, 0.0  ;;  %v542_v27 = vpop.eup %541 }
 0x228   : > { %330 = vadd.xlane.f32.xlu1 %v329_v25  ;;  %v320_v29 = vmul.f32 %v542_v27, %v319_v28 }
 0x2b5   : > { %v331_v30 = vpop.xlane.xlu1 %330 }
 0x2b6   : > { %v332_v31 = vadd.f32 %v331_v30, %v320_v29 }
 0x2b8   : > { %334 = vst.msk [vmem:[#allocation3] sm:$0xff] %vm207_vm0, %v332_v31 }
 0x2b9 PF: > { %v339_v32 = vld [vmem:[#allocation2] sm:$0xff] }
 0x2ba   : > { %341 = vst.msk [vmem:[%s632_s28] sm:$0xff] %vm207_vm0, %v339_v32 }
 0x2bf   : > { %v342_v33 = vld [vmem:[#allocation3] sm:$0xff] }
 0x2c0   : > { %343 = vst.msk [vmem:[%s640_s8] sm:$0xff] %vm207_vm0, %v342_v33 }
 0x2c1 PF: > { %s16_s19 = sadd.s32 1, %s565_s19   ;;  %s669_s17 = smov %s561_s18 }
 0x2c2   : > { %p13_p7 = scmp.ge.s32.totalorder %s16_s19, 4   ;;  %s670_s18 = smov %s672_s0 }
 0x2c4   :  { %15 = sbr.rel (!%p13_p7) target bundleno = 2 (0x2), region = 82 }

// kernel: moco_forward.4
= control target key start
LH: loop header
LB: loop body
LE: loop exit
PB: predicated region body
PF: predicated region fallthrough
CT: control target
= control target key end

     0   :  { %17 = vsyncpa [#allocation3], 0  ;;  %v464_v3 = vmov 0.0|0.0   ;;  %vm465_vm0 = vmmov 0   ;;  %v466_v9 = vmov 0.0   ;;  %s607_s0 = inlined_call_operand.vmem [shape: f32[8,32], index: 0, kind: input, shape index: {}]   ;;  %s608_s1 = inlined_call_operand.vmem [shape: f32[8,32], index: 1, kind: input, shape index: {}]   ;;  %s609_s2 = inlined_call_operand.vmem [shape: f32[32,128], index: 2, kind: input, shape index: {}]   ;;  %s610_s3 = inlined_call_operand.vmem [shape: f32[1,128], index: 3, kind: input, shape index: {}]   ;;  %s611_s4 = inlined_call_operand.vmem [shape: f32[32,128], index: 4, kind: input, shape index: {}]   ;;  %s612_s5 = inlined_call_operand.vmem [shape: f32[1,128], index: 5, kind: input, shape index: {}]   ;;  %s613_s6 = inlined_call_operand.hbm [shape: f32[8,128], index: 6, kind: output, shape index: {0}]   ;;  %s614_s7 = inlined_call_operand.hbm [shape: bf16[8,128], index: 7, kind: output, shape index: {1}]   ;;  %s615_s8 = inlined_call_operand.vmem [shape: f32[8,128], index: 8, kind: output, shape index: {2}]   ;;  %s616_s9 = inlined_call_operand.vmem [shape: f32[8,1], index: 9, kind: output, shape index: {3}]   ;;  %s617_s10 = inlined_call_operand.vmem [shape: f32[8,1], index: 10, kind: output, shape index: {4}]   ;;  %s618_s11 = inlined_call_operand.vmem [shape: f32[8,1], index: 11, kind: output, shape index: {5}]  }
   0x1   :  { %v118_v0 = vld [vmem:[%s611_s4] sm:$0xff]  ;;  %v119_v1 = vld [vmem:[%s611_s4 + $0x8] sm:$0xff]  ;;  %399 = vmatprep.subr.bf16.mxu1 %v464_v3  ;;  %393 = vmatprep.subr.bf16.mxu0 %v464_v3  ;;  %v120_v6 = vld [vmem:[%s611_s4 + $0x10] sm:$0xff] }
   0x2   :  { %v32_v2 = vld [vmem:[%s609_s2] sm:$0xff]  ;;  %v400_v4 = vpack.c.bf16 %v119_v1, %v118_v0  ;;  %v33_v5 = vld [vmem:[%s609_s2 + $0x8] sm:$0xff]  ;;  %v121_v7 = vld [vmem:[%s611_s4 + $0x18] sm:$0xff]  ;;  %385 = vmatprep.mubr.msk.f32.mxu1 %vm465_vm0, %v466_v9  ;;  %374 = vmatprep.mubr.msk.f32.mxu0 %vm465_vm0, %v466_v9 }
   0x3   :  { %v394_v8 = vpack.c.bf16 %v33_v5, %v32_v2  ;;  %v34_v10 = vld [vmem:[%s609_s2 + $0x10] sm:$0xff]  ;;  %v35_v11 = vld [vmem:[%s609_s2 + $0x18] sm:$0xff]  ;;  %v403_v12 = vpack.c.bf16 %v121_v7, %v120_v6 }
   0x4   :  { %401 = vmatpush3.bf16.msra.mxu1 %v400_v4 }
   0x5   :  { %18 = vsyncpa [#allocation5], 0  ;;  %395 = vmatpush3.bf16.msra.mxu0 %v394_v8  ;;  %402 = vmatprep.subr.bf16.mxu1 %v464_v3  ;;  %v397_v13 = vpack.c.bf16 %v35_v11, %v34_v10  ;;  %vm43_vm1 = vcmask 261120   ;;  %v117_v14 = vld [vmem:[%s608_s1] sm:$0xff]  ;;  %vm294_vm2 = vcmask 64512   ;;  %vm222_vm3 = vcmask 7168  }
   0x6   :  { %396 = vmatprep.subr.bf16.mxu0 %v464_v3  ;;  %v31_v15 = vld [vmem:[%s607_s0] sm:$0xff]  ;;  %s467_s21 = smov [#allocation2]   ;;  %s468_s23 = smov [#allocation4]  }
   0x7   :  { %v352_v16 = vld [vmem:[%s612_s5] ss:$0 sm:$0xff]  ;;  %s312_s22 = sshll.u32 %s467_s21, 4  ;;  %s322_s24 = sshll.u32 %s468_s23, 4  ;;  %s313_s22 = int_to_ptr.vmem [resolvable:$true] %s312_s22  ;;  %s323_s24 = int_to_ptr.vmem [resolvable:$true] %s322_s24 }
   0x8   :  { %404 = vmatpush3.bf16.msra.mxu1 %v403_v12  ;;  %v350_v17 = vld [vmem:[%s610_s3] ss:$0 sm:$0xff]  ;;  %s416_s25 = scalar_lea.vmem %s313_s22, 128  ;;  %p421_p1 = scmp.lt.s32.totalorder %s313_s22, %s313_s22 }
   0x9   :  { %398 = vmatpush3.bf16.msra.mxu0 %v397_v13  ;;  %p417_p0 = scmp.ne.s32.totalorder %s313_s22, %s416_s25  ;;  %p422_p2 = scmp.lt.s32.totalorder %s416_s25, %s416_s25 }
   0xa   :  { %388 = vmatprep.subr.mxu0 %v466_v9 }
   0xb   :  { %386 = vmatmul.mubr.msk.f32.vlgmr.msra.gmra.mrb[0].mxu1 %vm43_vm1, %v117_v14  ;;  %p423_p3 = por %p422_p2, %p421_p1 }
   0xc   :  { %375 = vmatmul.mubr.msk.f32.vlgmr.msra.gmra.mrb[0].mxu0 %vm43_vm1, %v31_v15 }
   0xd   :  { %390 = vmatprep.mubr.msk.f32.mxu0 %vm465_vm0, %v466_v9  ;;  %p424_p4 = pnand %p423_p3, %p417_p0 }
  0xde   :  { %v198_v18 = vpop.f32.mrb[0].mxu1 }
  0xdf   :  { %v199_v19 = vadd.f32 %v352_v16, %v198_v18  ;;  %v387_v20 = vpop.f32.mrb[1].mxu1  ;;  %v113_v21 = vpop.f32.mrb[0].mxu0 }
  0xe0   :  { %v114_v22 = vadd.f32 %v350_v17, %v113_v21  ;;  %v376_v23 = vpop.f32.mrb[1].mxu0 }
  0xe1   :  { %202 = vst [vmem:[#allocation2] sm:$0xff] %v199_v19  ;;  %v209_v24 = vmul.f32 %v199_v19, %v199_v19 }
  0xe2   :  { %v203_v25 = vmul.f32 %v114_v22, %v114_v22 }
  0xe3   :  { %210 = vadd.xlane.f32.xlu0 %v209_v24 }
  0xe7   :  { %204 = vadd.xlane.f32.xlu0 %v203_v25 }
 0x170   :  { %v211_v26 = vpop.xlane.xlu0 %210 }
 0x171   :  { %v212_v27 = vmax.f32 %v211_v26, 1e-24 }
 0x173   :  { %410 = vrsqrt.f32 %v212_v27 }
 0x174   :  { %v205_v28 = vpop.xlane.xlu0 %204 }
 0x175   :  { %v206_v29 = vmax.f32 %v205_v28, 1e-24 }
 0x177   :  { %412 = vrsqrt.f32 %v206_v29 }
 0x17d   :  { %v411_v30 = vpop.eup %410 }
 0x17e   :  { %v214_v31 = vmul.f32 %v411_v30, %v199_v19 }
 0x180   :  { %389 = vmatpush3.xpose.msra.mxu0 %v214_v31  ;;  %v215_v32 = vpack.c.bf16 %v214_v31, %v214_v31 }
 0x181   :  { %v413_v33 = vpop.eup %412 }
 0x182   :  { %v208_v34 = vmul.f32 %v413_v33, %v114_v22  ;;  %216 = vst [vmem:[#allocation4] sm:$0xf] %v215_v32 }
 0x184   :  { %v217_v35 = vmul.f32 20.0, %v208_v34 }
 0x186   :  { %218 = vst [vmem:[%s615_s8] sm:$0xff] %v217_v35  ;;  %391 = vmatmul.mubr.f32.vlgmr.msra.gmra.mrb[2].mxu0 %v217_v35  ;;  %v219_v36 = vmul.f32 %v217_v35, %v214_v31 }
 0x259   :  { %v290_v37 = vpop.f32.mrb[2].mxu0 }
 0x25a   :  { %v392_v38 = vpop.f32.mrb[3].mxu0  ;;  %v295_v39 = vsel %vm294_vm2, %v290_v37, -inf }
 0x25b   :  { %296 = vmax.xlane.f32.xlu1 %v295_v39 }
 0x25f   :  { %220 = vadd.xlane.f32.xlu1 %v219_v36 }
 0x2e8   :  { %v297_v40 = vpop.xlane.xlu1 %296 }
 0x2e9   :  { %298 = vst.msk [vmem:[%s617_s10] sm:$0xff] %vm222_vm3, %v297_v40  ;;  %v299_v41 = vsub.f32 %v290_v37, %v297_v40 }
 0x2eb   :  { %v300_v42 = vmul.f32 1.442695, %v299_v41 }
 0x2ec   :  { %v221_v43 = vpop.xlane.xlu1 %220 }
 0x2ed   :  { %414 = vpow2.f32 %v300_v42  ;;  %223 = vst.msk [vmem:[%s616_s9] sm:$0xff] %vm222_vm3, %v221_v43 }
 0x2f7   :  { %v415_v44 = vpop.eup %414 }
 0x2f8   :  { %v302_v45 = vsel %vm294_vm2, %v415_v44, 0.0 }
 0x2f9   :  { %303 = vadd.xlane.f32.xlu0 %v302_v45 }
 0x2fa   :  { %427 = shalt.err (!%p424_p4)
}
 0x2fb   :  { %s428_s9 = scalar_lea.hbm %s613_s6, 128 }
 0x2fc   :  { %p429_p5 = scmp.ne.s32.totalorder %s613_s6, %s428_s9  ;;  %p432_p6 = scmp.lt.u32.totalorder %s428_s9, %s613_s6 }
 0x2fe   :  { %p434_p7 = pnand %p432_p6, %p429_p5 }
 0x300   :  { %437 = shalt.err (!%p434_p7)
}
 0x301   :  { %315 = dma.vmem_to_hbm [thread:$0]  %s313_s22, 128, %s613_s6, [#allocation3]  }
 0x302   :  { %s438_s4 = scalar_lea.vmem %s323_s24, 64  ;;  %p443_p9 = scmp.lt.s32.totalorder %s323_s24, %s323_s24 }
 0x303   :  { %p439_p8 = scmp.ne.s32.totalorder %s323_s24, %s438_s4  ;;  %p444_p10 = scmp.lt.s32.totalorder %s438_s4, %s438_s4 }
 0x305   :  { %p445_p11 = por %p444_p10, %p443_p9 }
 0x307   :  { %p446_p12 = pnand %p445_p11, %p439_p8 }
 0x309   :  { %449 = shalt.err (!%p446_p12)
}
 0x30a   :  { %s450_s16 = scalar_lea.hbm %s614_s7, 64 }
 0x30b   :  { %p451_p13 = scmp.ne.s32.totalorder %s614_s7, %s450_s16  ;;  %p454_p0 = scmp.lt.u32.totalorder %s450_s16, %s614_s7 }
 0x30d   :  { %p456_p1 = pnand %p454_p0, %p451_p13 }
 0x30f   :  { %459 = shalt.err (!%p456_p1)
}
 0x310   :  { %325 = dma.vmem_to_hbm [thread:$0]  %s323_s24, 64, %s614_s7, [#allocation5]  }
 0x386   :  { %v304_v46 = vpop.xlane.xlu0 %303 }
 0x387   :  { %305 = vst.msk [vmem:[%s618_s11] sm:$0xff] %vm222_vm3, %v304_v46 }
 0x388   :  { %460 = dma.done.wait [#allocation3], 128  }
 0x389   :  { %461 = vsyncadd [#allocation3], 4294967168 }
 0x38a   :  { %462 = dma.done.wait [#allocation5], 64  }
 0x38b   :  { %463 = vsyncadd [#allocation5], 4294967232 }
 0x38c   :  { %348 = vsyncpa [#allocation3], 1 }
 0x38d   :  { %349 = vsyncpa [#allocation5], 1 }

</bundles_post_ra>
